<compile_context>
chip_gen: v7x
topology: tpu7x:2x2x1
jax: 0.10.0
libtpu: 0.0.40
codegen_flags: <defaults>
</compile_context>

<pallas_src>
import functools

import jax
import jax.numpy as jnp
from jax.experimental import pallas as pl
from jax.experimental.pallas import tpu as pltpu


def _calib_stats_kernel(logits_ref, labels_ref, out_ref, *,
                        target_confidence, batch_size, block_rows):
    """Per-tile partial sums for the confidence-calibration statistics.

    logits_ref: (TB, C) native dtype -> upcast to f32 after the VMEM load.
    labels_ref: (TB, 1) int32.
    out_ref:    (8, 128) f32; lanes 0/1/2 carry (sum_sq, sum_p, count).
    """
    i = pl.program_id(0)

    logits = logits_ref[...].astype(jnp.float32)          # (TB, C)
    labels = labels_ref[...]                               # (TB, 1) int32
    tb = logits.shape[0]

    # Row-validity mask for the (possibly padded) last batch tile.
    row_idx = jax.lax.broadcasted_iota(jnp.int32, (tb, 1), 0)
    valid = (i * block_rows + row_idx) < batch_size        # (TB, 1) bool

    # Target classes: labels in {0, 2}.
    is_target = (labels == 0) | (labels == 2)
    full_mask = valid & is_target                          # (TB, 1) bool

    # Numerically stable softmax without materializing the full probs matrix.
    m = jnp.max(logits, axis=1, keepdims=True)
    e = jnp.exp(logits - m)                                # (TB, C)
    denom = jnp.sum(e, axis=1, keepdims=True)              # (TB, 1)
    cls_idx = jax.lax.broadcasted_iota(jnp.int32, logits.shape, 1)
    correct_e = jnp.sum(jnp.where(cls_idx == labels, e, 0.0),
                        axis=1, keepdims=True)             # (TB, 1)
    correct_probs = correct_e * pl.reciprocal(denom, approx=True)

    diff = correct_probs - jnp.float32(target_confidence)
    # jnp.where (not multiply) so garbage in padded rows can never produce NaN.
    sum_sq = jnp.sum(jnp.where(full_mask, diff * diff, 0.0))
    sum_p = jnp.sum(jnp.where(full_mask, correct_probs, 0.0))
    cnt = jnp.sum(full_mask.astype(jnp.float32))

    # Lane-dense, unmasked (8, 128) store; lanes 0/1/2 of every sublane carry
    # the three per-tile stats.
    lane = jax.lax.broadcasted_iota(jnp.int32, out_ref.shape, 1)
    out_ref[...] = (jnp.where(lane == 0, sum_sq, 0.0)
                    + jnp.where(lane == 1, sum_p, 0.0)
                    + jnp.where(lane == 2, cnt, 0.0))


def _round_up(x, m):
    return (x + m - 1) // m * m


def confidence_calibration_loss(logits, labels, base_loss,
                                lambda_calibration=0.1,
                                target_confidence=0.9):
    """JAX/Pallas equivalent of ConfidenceCalibrationLoss.forward.

    logits: [B, C] float (any dtype; kept native for the DMA), labels: [B] int,
    base_loss: scalar float.  Returns (total_loss, metrics_dict).
    """
    B, C = logits.shape
    labels2d = labels.reshape(B, 1).astype(jnp.int32)

    # Tile size: 2x double-buffered input + ~2x (TB, C) f32 temporaries must
    # fit in scoped VMEM on every generation (v7x: 64 MiB physical / 32 MiB
    # scoped default).  Budget ~24 MiB -> worst case ~16 bytes per element.
    vmem_budget_bytes = 24 * 1024 * 1024
    worst_bytes_per_row = C * 16
    tb = (vmem_budget_bytes // worst_bytes_per_row) // 8 * 8
    tb = max(8, min(1024, tb, _round_up(B, 8)))
    num_tiles = pl.cdiv(B, tb)

    kernel = functools.partial(
        _calib_stats_kernel,
        target_confidence=float(target_confidence),
        batch_size=B,
        block_rows=tb,
    )

    stats = pl.pallas_call(
        kernel,
        out_shape=jax.ShapeDtypeStruct((num_tiles * 8, 128), jnp.float32),
        grid_spec=pltpu.PrefetchScalarGridSpec(
            num_scalar_prefetch=0,
            grid=(num_tiles,),
            in_specs=[
                pl.BlockSpec((tb, C), lambda i: (i, 0)),   # logits, native dtype
                pl.BlockSpec((tb, 1), lambda i: (i, 0)),   # labels
            ],
            out_specs=pl.BlockSpec((8, 128), lambda i: (i, 0)),
        ),
        compiler_params=pltpu.CompilerParams(
            # Batch tiles are independent -> shard across TCs on v7x;
            # harmless on single-TC v5e/v6e.
            dimension_semantics=("parallel",),
            vmem_limit_bytes=48 * 1024 * 1024,
        ),
    )(logits, labels2d)   # NOTE: logits passed in native dtype, no wrapper upcast.

    # Tiny per-tile partials -> reduce in plain JAX (f32).
    partials = stats.reshape(num_tiles, 8, 128)[:, 0, :]   # (num_tiles, 128)
    sum_sq = jnp.sum(partials[:, 0])
    sum_p = jnp.sum(partials[:, 1])
    cnt = jnp.sum(partials[:, 2])

    has_target = cnt > 0.0
    safe_cnt = jnp.maximum(cnt, 1.0)
    confidence_loss = jnp.where(has_target, sum_sq / safe_cnt, 0.0)
    avg_target_confidence = jnp.where(has_target, sum_p / safe_cnt, 0.0)

    base_loss = jnp.asarray(base_loss, jnp.float32)
    total_loss = jnp.where(
        has_target,
        base_loss + jnp.float32(lambda_calibration) * confidence_loss,
        base_loss,
    )

    metrics = {
        "base_loss": base_loss,
        "confidence_loss": confidence_loss,
        "avg_target_confidence": avg_target_confidence,
        "has_target": has_target,
    }
    return total_loss, metrics


def _reference(logits, labels, base_loss, lambda_calibration, target_confidence):
    """Pure-JAX reference mirroring the PyTorch module."""
    probs = jax.nn.softmax(logits.astype(jnp.float32), axis=1)
    correct = jnp.take_along_axis(probs, labels[:, None], axis=1)[:, 0]
    mask = (labels == 0) | (labels == 2)
    cnt = jnp.sum(mask.astype(jnp.float32))
    sq = jnp.sum(jnp.where(mask, (correct - target_confidence) ** 2, 0.0))
    conf_loss = jnp.where(cnt > 0, sq / jnp.maximum(cnt, 1.0), 0.0)
    total = jnp.where(cnt > 0,
                      base_loss + lambda_calibration * conf_loss,
                      base_loss)
    return total, conf_loss


if __name__ == "__main__":
    key = jax.random.PRNGKey(0)
    k1, k2, k3 = jax.random.split(key, 3)

    B, C = 12, 4  # small batch, num_classes=4 (labels in 0..3); B % 8 != 0
                  # so the padded-row masking path is exercised.
    logits = jax.random.normal(k1, (B, C), dtype=jnp.float32).astype(jnp.bfloat16)
    labels = jax.random.randint(k2, (B,), 0, C, dtype=jnp.int32)
    # make sure at least one "target" class (0 or 2) is present
    labels = labels.at[0].set(0).at[1].set(2)
    base_loss = jnp.abs(jax.random.normal(k3, (), dtype=jnp.float32))

    total_loss, metrics = confidence_calibration_loss(
        logits, labels, base_loss,
        lambda_calibration=0.1, target_confidence=0.9,
    )
    jax.block_until_ready(total_loss)
    jax.block_until_ready(metrics["confidence_loss"])
    jax.block_until_ready(metrics["avg_target_confidence"])

    ref_total, ref_conf = _reference(logits, labels, base_loss, 0.1, 0.9)
    assert abs(float(total_loss) - float(ref_total)) < 1e-2, (
        float(total_loss), float(ref_total))
    assert abs(float(metrics["confidence_loss"]) - float(ref_conf)) < 1e-2, (
        float(metrics["confidence_loss"]), float(ref_conf))

    print("KERNEL_OK")
</pallas_src>

<mosaic_0001>
module attributes {stable_mosaic.version = 11 : i64} {
  func.func @_calib_stats_kernel(%arg0: i32, %arg1: memref<16x4xbf16, #tpu.memory_space<vmem>>, %arg2: memref<16x1xi32, #tpu.memory_space<vmem>>, %arg3: memref<8x128xf32, #tpu.memory_space<vmem>>) attributes {dimension_semantics = [#tpu.dimension_semantics<parallel>], iteration_bounds = array<i64: 1>, scalar_prefetch = 0 : i64, scratch_operands = 0 : i64, tpu.core_type = #tpu.core_type<tc>, window_params = [{transform_indices = @transform_0, window_bounds = array<i64: 16, 4>}, {transform_indices = @transform_1, window_bounds = array<i64: 16, 1>}, {transform_indices = @transform_2, window_bounds = array<i64: 8, 128>}]} {
    %c0 = arith.constant 0 : index
    %c0_0 = arith.constant 0 : index
    %0 = vector.load %arg1[%c0, %c0_0] : memref<16x4xbf16, #tpu.memory_space<vmem>>, vector<16x4xbf16>
    %1 = arith.extf %0 : vector<16x4xbf16> to vector<16x4xf32>
    %c0_1 = arith.constant 0 : index
    %c0_2 = arith.constant 0 : index
    %2 = vector.load %arg2[%c0_1, %c0_2] : memref<16x1xi32, #tpu.memory_space<vmem>>, vector<16x1xi32>
    %3 = tpu.iota {dimensions = array<i32: 0>} : vector<16x1xi32>
    %c16_i32 = arith.constant 16 : i32
    %4 = arith.muli %arg0, %c16_i32 : i32
    %5 = vector.broadcast %4 : i32 to vector<16x1xi32>
    %6 = arith.addi %5, %3 : vector<16x1xi32>
    %c12_i32 = arith.constant 12 : i32
    %7 = vector.broadcast %c12_i32 : i32 to vector<16x1xi32>
    %8 = arith.cmpi slt, %6, %7 : vector<16x1xi32>
    %c0_i32 = arith.constant 0 : i32
    %9 = vector.broadcast %c0_i32 : i32 to vector<16x1xi32>
    %10 = arith.cmpi eq, %2, %9 : vector<16x1xi32>
    %c2_i32 = arith.constant 2 : i32
    %11 = vector.broadcast %c2_i32 : i32 to vector<16x1xi32>
    %12 = arith.cmpi eq, %2, %11 : vector<16x1xi32>
    %13 = arith.ori %10, %12 : vector<16x1xi1>
    %14 = arith.andi %8, %13 : vector<16x1xi1>
    %cst = arith.constant dense<0xFF800000> : vector<16xf32>
    %15 = vector.multi_reduction <maximumf>, %1, %cst [1] : vector<16x4xf32> to vector<16xf32>
    %16 = vector.shape_cast %15 : vector<16xf32> to vector<16x1xf32>
    %17 = vector.broadcast %16 : vector<16x1xf32> to vector<16x4xf32>
    %18 = arith.subf %1, %17 : vector<16x4xf32>
    %19 = math.exp %18 : vector<16x4xf32>
    %cst_3 = arith.constant dense<0.000000e+00> : vector<16xf32>
    %20 = vector.multi_reduction <add>, %19, %cst_3 [1] : vector<16x4xf32> to vector<16xf32>
    %21 = vector.shape_cast %20 : vector<16xf32> to vector<16x1xf32>
    %22 = tpu.iota {dimensions = array<i32: 1>} : vector<16x4xi32>
    %23 = vector.broadcast %2 : vector<16x1xi32> to vector<16x4xi32>
    %24 = arith.cmpi eq, %22, %23 : vector<16x4xi32>
    %cst_4 = arith.constant 0.000000e+00 : f32
    %25 = vector.broadcast %cst_4 : f32 to vector<16x4xf32>
    %26 = arith.select %24, %19, %25 : vector<16x4xi1>, vector<16x4xf32>
    %cst_5 = arith.constant dense<0.000000e+00> : vector<16xf32>
    %27 = vector.multi_reduction <add>, %26, %cst_5 [1] : vector<16x4xf32> to vector<16xf32>
    %28 = vector.shape_cast %27 : vector<16xf32> to vector<16x1xf32>
    %29 = tpu.reciprocal %21 {approx = true} : vector<16x1xf32> -> vector<16x1xf32>
    %30 = arith.mulf %28, %29 : vector<16x1xf32>
    %cst_6 = arith.constant 0.899999976 : f32
    %31 = vector.broadcast %cst_6 : f32 to vector<16x1xf32>
    %32 = arith.subf %30, %31 : vector<16x1xf32>
    %33 = arith.mulf %32, %32 : vector<16x1xf32>
    %cst_7 = arith.constant 0.000000e+00 : f32
    %34 = vector.broadcast %cst_7 : f32 to vector<16x1xf32>
    %35 = arith.select %14, %33, %34 : vector<16x1xi1>, vector<16x1xf32>
    %36 = vector.shape_cast %35 : vector<16x1xf32> to vector<1x16x1xf32>
    %cst_8 = arith.constant dense<0.000000e+00> : vector<1xf32>
    %37 = vector.multi_reduction <add>, %36, %cst_8 [1, 2] : vector<1x16x1xf32> to vector<1xf32>
    %38 = vector.shape_cast %37 : vector<1xf32> to vector<1x1x1xf32>
    %39 = vector.extract %38[0, 0, 0] : f32 from vector<1x1x1xf32>
    %cst_9 = arith.constant 0.000000e+00 : f32
    %40 = vector.broadcast %cst_9 : f32 to vector<16x1xf32>
    %41 = arith.select %14, %30, %40 : vector<16x1xi1>, vector<16x1xf32>
    %42 = vector.shape_cast %41 : vector<16x1xf32> to vector<1x16x1xf32>
    %cst_10 = arith.constant dense<0.000000e+00> : vector<1xf32>
    %43 = vector.multi_reduction <add>, %42, %cst_10 [1, 2] : vector<1x16x1xf32> to vector<1xf32>
    %44 = vector.shape_cast %43 : vector<1xf32> to vector<1x1x1xf32>
    %45 = vector.extract %44[0, 0, 0] : f32 from vector<1x1x1xf32>
    %46 = arith.extui %14 : vector<16x1xi1> to vector<16x1xi32>
    %47 = arith.sitofp %46 : vector<16x1xi32> to vector<16x1xf32>
    %48 = vector.shape_cast %47 : vector<16x1xf32> to vector<1x16x1xf32>
    %cst_11 = arith.constant dense<0.000000e+00> : vector<1xf32>
    %49 = vector.multi_reduction <add>, %48, %cst_11 [1, 2] : vector<1x16x1xf32> to vector<1xf32>
    %50 = vector.shape_cast %49 : vector<1xf32> to vector<1x1x1xf32>
    %51 = vector.extract %50[0, 0, 0] : f32 from vector<1x1x1xf32>
    %52 = tpu.iota {dimensions = array<i32: 1>} : vector<8x128xi32>
    %c0_i32_12 = arith.constant 0 : i32
    %53 = vector.broadcast %c0_i32_12 : i32 to vector<8x128xi32>
    %54 = arith.cmpi eq, %52, %53 : vector<8x128xi32>
    %cst_13 = arith.constant 0.000000e+00 : f32
    %55 = vector.broadcast %39 : f32 to vector<8x128xf32>
    %56 = vector.broadcast %cst_13 : f32 to vector<8x128xf32>
    %57 = arith.select %54, %55, %56 : vector<8x128xi1>, vector<8x128xf32>
    %c1_i32 = arith.constant 1 : i32
    %58 = vector.broadcast %c1_i32 : i32 to vector<8x128xi32>
    %59 = arith.cmpi eq, %52, %58 : vector<8x128xi32>
    %cst_14 = arith.constant 0.000000e+00 : f32
    %60 = vector.broadcast %45 : f32 to vector<8x128xf32>
    %61 = vector.broadcast %cst_14 : f32 to vector<8x128xf32>
    %62 = arith.select %59, %60, %61 : vector<8x128xi1>, vector<8x128xf32>
    %63 = arith.addf %57, %62 : vector<8x128xf32>
    %c2_i32_15 = arith.constant 2 : i32
    %64 = vector.broadcast %c2_i32_15 : i32 to vector<8x128xi32>
    %65 = arith.cmpi eq, %52, %64 : vector<8x128xi32>
    %cst_16 = arith.constant 0.000000e+00 : f32
    %66 = vector.broadcast %51 : f32 to vector<8x128xf32>
    %67 = vector.broadcast %cst_16 : f32 to vector<8x128xf32>
    %68 = arith.select %65, %66, %67 : vector<8x128xi1>, vector<8x128xf32>
    %69 = arith.addf %63, %68 : vector<8x128xf32>
    %c0_17 = arith.constant 0 : index
    %c0_18 = arith.constant 0 : index
    %70 = vector.load %arg3[%c0_17, %c0_18] : memref<8x128xf32, #tpu.memory_space<vmem>>, vector<8x128xf32>
    tpu.vector_store %arg3[%c0_17, %c0_18], %69 {strides = array<i32>} : memref<8x128xf32, #tpu.memory_space<vmem>>, vector<8x128xf32>,
    return
  }
  func.func @transform_0(%arg0: i32) -> (i32, i32) {
    %c0_i32 = arith.constant 0 : i32
    %c0_i32_0 = arith.constant 0 : i32
    return %arg0, %c0_i32 : i32, i32
  }
  func.func @transform_1(%arg0: i32) -> (i32, i32) {
    %c0_i32 = arith.constant 0 : i32
    %c0_i32_0 = arith.constant 0 : i32
    return %arg0, %c0_i32 : i32, i32
  }
  func.func @transform_2(%arg0: i32) -> (i32, i32) {
    %c0_i32 = arith.constant 0 : i32
    %c0_i32_0 = arith.constant 0 : i32
    return %arg0, %c0_i32 : i32, i32
  }
}

</mosaic_0001>

<bundles_post_ra>
// kernel: tpu_custom_call.1
= control target key start
LH: loop header
LB: loop body
LE: loop exit
PB: predicated region body
PF: predicated region fallthrough
CT: control target
= control target key end

     0   :  { %vm35_vm0 = vcmask 31744   ;;  %v202_v4 = vmov 0   ;;  %s280_s0 = inlined_call_operand.vmem [shape: bf16[12,4], index: 0, kind: input, shape index: {}]   ;;  %s281_s1 = inlined_call_operand.vmem [shape: s32[12,1], index: 1, kind: input, shape index: {}]   ;;  %s282_s2 = inlined_call_operand.hbm [shape: f32[8,128], index: 2, kind: output, shape index: {}]  }
   0x1   :  { %v156_v0 = vld [vmem:[%s280_s0] sm:$0xff]   ;;  %168 = vset.pattern.permute.xlu1 %v202_v4  ;;  %169 = vset.pattern.permute.xlu0 %v202_v4 }
   0x2   :  { %v16_v1 = vld [vmem:[%s281_s1] sm:$0xff]  ;;  %v157_v2 = vunpack.c.l.bf16 %v156_v0  ;;  %v158_v3 = vunpack.c.h.bf16 %v156_v0 }
   0x3   :  { %7 = vsyncpa [#allocation3], 0  ;;  %57 = vperm.xlu1 %168, %v16_v1   ;;  %v17_v6 = vld [vmem:[%s281_s1 + $0x8] sm:$0xff]  ;;  %v18_v13 = vlaneseq  ;;  %vm27_vm5 = vcmp.eq.s32.totalorder %v16_v1, 0  ;;  %vm29_vm6 = vcmp.eq.s32.totalorder %v16_v1, 2  ;;  %vm82_vm11 = vcmask 7168  }
   0x4   :  { %v36_v5 = vsel %vm35_vm0, %v157_v2, -inf  ;;  %v39_v7 = vsel %vm35_vm0, %v158_v3, -inf  ;;  %vm28_vm3 = vcmp.eq.s32.totalorder %v17_v6, 0  ;;  %vm30_vm4 = vcmp.eq.s32.totalorder %v17_v6, 2  ;;  %vm239_vm9 = vmor %vm27_vm5, %vm29_vm6  ;;  %s204_s16 = smov [#allocation2]  }
   0x5   :  { %37 = vmax.xlane.f32.xlu0 %v36_v5  ;;  %v231_v16 = vand.u32 127, %v18_v13  ;;  %v19_v26 = vshrl.u32 %v18_v13, 7  ;;  %vm32_vm7 = vmor %vm28_vm3, %vm30_vm4  ;;  %v203_v30 = vmov 0.0   ;;  %s143_s17 = sshll.u32 %s204_s16, 4  ;;  %s144_s17 = int_to_ptr.vmem [resolvable:$true] %s143_s17 }
   0x6   :  { %v153_v31 = vsel %vm239_vm9, 1.0, %v203_v30  ;;  %s178_s18 = scalar_lea.vmem %s144_s17, 128  ;;  %p183_p1 = scmp.lt.s32.totalorder %s144_s17, %s144_s17 }
   0x7   :  { %60 = vperm.xlu1 %168, %v17_v6   ;;  %v20_v27 = vadd.s32 8, %v19_v26  ;;  %v113_v33 = vsel %vm82_vm11, %v153_v31, 0.0  ;;  %vm125_vm12 = vcmp.eq.s32.totalorder %v231_v16, 0  ;;  %vm128_vm13 = vcmp.eq.s32.totalorder %v231_v16, 1  ;;  %p179_p0 = scmp.ne.s32.totalorder %s144_s17, %s178_s18  ;;  %p184_p2 = scmp.lt.s32.totalorder %s178_s18, %s178_s18 }
   0x8   :  { %vm132_vm14 = vcmp.eq.s32.totalorder %v231_v16, 2 }
   0x9   :  { %40 = vmax.xlane.f32.xlu0 %v39_v7  ;;  %vm26_vm8 = vcmp.lt.s32.totalorder %v20_v27, 12  ;;  %p185_p3 = por %p184_p2, %p183_p1 }
   0xa   :  { %vm243_vm10 = vmand %vm26_vm8, %vm32_vm7 }
   0xb   :  { %v154_v32 = vsel %vm243_vm10, 1.0, %v203_v30  ;;  %p186_p4 = pnand %p185_p3, %p179_p0 }
   0xc   :  { %v114_v34 = vsel %vm82_vm11, %v154_v32, 0.0 }
   0xd   :  { %v115_v35 = vadd.f32 %v114_v34, %v113_v33 }
  0x82   :  { %v58_v15 = vpop.permute.xlu1 %57 }
  0x83   :  { %vm62_vm1 = vcmp.eq.s32.totalorder %v231_v16, %v58_v15 }
  0x86   :  { %v61_v18 = vpop.permute.xlu1 %60 }
  0x87   :  { %vm63_vm2 = vcmp.eq.s32.totalorder %v231_v16, %v61_v18 }
  0x92   :  { %v38_v8 = vpop.xlane.xlu0 %37 }
  0x93   :  { %v42_v9 = vsub.f32 %v157_v2, %v38_v8 }
  0x95   :  { %v44_v10 = vmul.f32 1.442695, %v42_v9 }
  0x96   :  { %v41_v11 = vpop.xlane.xlu0 %40 }
  0x97   :  { %170 = vpow2.f32 %v44_v10  ;;  %v43_v12 = vsub.f32 %v158_v3, %v41_v11 }
  0x99   :  { %v46_v14 = vmul.f32 1.442695, %v43_v12 }
  0x9b   :  { %172 = vpow2.f32 %v46_v14 }
  0xa1   :  { %v171_v17 = vpop.eup %170 }
  0xa2   :  { %v48_v19 = vsel %vm35_vm0, %v171_v17, 0.0  ;;  %v64_v20 = vsel %vm62_vm1, %v171_v17, 0.0 }
  0xa3   :  { %49 = vadd.xlane.f32.xlu0 %v48_v19  ;;  %v66_v22 = vsel %vm35_vm0, %v64_v20, 0.0 }
  0xa5   :  { %v173_v21 = vpop.eup %172 }
  0xa6   :  { %v51_v23 = vsel %vm35_vm0, %v173_v21, 0.0  ;;  %v65_v24 = vsel %vm63_vm2, %v173_v21, 0.0 }
  0xa7   :  { %67 = vadd.xlane.f32.xlu0 %v66_v22  ;;  %52 = vadd.xlane.f32.xlu1 %v51_v23  ;;  %v69_v25 = vsel %vm35_vm0, %v65_v24, 0.0 }
  0xab   :  { %70 = vadd.xlane.f32.xlu0 %v69_v25 }
 0x130   :  { %v50_v36 = vpop.xlane.xlu0 %49 }
 0x131   :  { %174 = vrcp.f32 %v50_v36 }
 0x134   :  { %v53_v37 = vpop.xlane.xlu1 %52  ;;  %v68_v38 = vpop.xlane.xlu0 %67 }
 0x135   :  { %176 = vrcp.f32 %v53_v37 }
 0x138   :  { %v71_v43 = vpop.xlane.xlu0 %70 }
 0x13b   :  { %v175_v39 = vpop.eup %174 }
 0x13c   :  { %v74_v40 = vmul.f32 %v175_v39, %v68_v38 }
 0x13e   :  { %v151_v41 = vadd.f32 -0.9, %v74_v40  ;;  %v95_v45 = vsel %vm239_vm9, %v74_v40, 0.0 }
 0x13f   :  { %v177_v42 = vpop.eup %176  ;;  %v97_v49 = vsel %vm82_vm11, %v95_v45, 0.0 }
 0x140   :  { %v78_v44 = vmul.f32 %v151_v41, %v151_v41  ;;  %v75_v46 = vmul.f32 %v177_v42, %v71_v43 }
 0x142   :  { %v152_v47 = vadd.f32 -0.9, %v75_v46  ;;  %v96_v48 = vsel %vm243_vm10, %v75_v46, 0.0  ;;  %v80_v53 = vsel %vm239_vm9, %v78_v44, 0.0 }
 0x143   :  { %v98_v50 = vsel %vm82_vm11, %v96_v48, 0.0  ;;  %v83_v55 = vsel %vm82_vm11, %v80_v53, 0.0 }
 0x144   :  { %v79_v51 = vmul.f32 %v152_v47, %v152_v47  ;;  %v99_v52 = vadd.f32 %v98_v50, %v97_v49 }
 0x146   :  { %100 = vadd.xlane.f32.xlu0 %v99_v52  ;;  %v81_v54 = vsel %vm243_vm10, %v79_v51, 0.0 }
 0x147   :  { %v84_v56 = vsel %vm82_vm11, %v81_v54, 0.0 }
 0x148   :  { %v85_v57 = vadd.f32 %v84_v56, %v83_v55 }
 0x14a   :  { %86 = vadd.xlane.f32.xlu0 %v85_v57 }
 0x14e   :  { %116 = vadd.xlane.f32.xlu0 %v115_v35 }
 0x1d3   :  { %v101_v58 = vpop.xlane.xlu0 %100 }
 0x1d4   :  { %v102_v59 = vrot.slane %v101_v58, 4 }
 0x1d6   :  { %v103_v60 = vadd.f32 %v102_v59, %v101_v58 }
 0x1d7   :  { %v87_v61 = vpop.xlane.xlu0 %86 }
 0x1d8   :  { %v104_v62 = vrot.slane %v103_v60, 2  ;;  %v88_v63 = vrot.slane %v87_v61, 4 }
 0x1da   :  { %v89_v0 = vadd.f32 %v88_v63, %v87_v61  ;;  %v105_v2 = vadd.f32 %v104_v62, %v103_v60 }
 0x1db   :  { %v117_v1 = vpop.xlane.xlu0 %116 }
 0x1dc   :  { %v90_v3 = vrot.slane %v89_v0, 2  ;;  %v118_v4 = vrot.slane %v117_v1, 4  ;;  %v106_v7 = vrot.slane %v105_v2, 1 }
 0x1de   :  { %v119_v5 = vadd.f32 %v118_v4, %v117_v1  ;;  %v91_v6 = vadd.f32 %v90_v3, %v89_v0  ;;  %v107_v12 = vadd.f32 %v106_v7, %v105_v2 }
 0x1e0   :  { %v120_v8 = vrot.slane %v119_v5, 2  ;;  %v92_v9 = vrot.slane %v91_v6, 1 }
 0x1e2   :  { %v121_v10 = vadd.f32 %v120_v8, %v119_v5  ;;  %v93_v11 = vadd.f32 %v92_v9, %v91_v6 }
 0x1e4   :  { %159 = vpush %v93_v11  ;;  %v122_v13 = vrot.slane %v121_v10, 1 }
 0x1e5   :  { %161 = vpush %v107_v12 }
 0x1e6   :  { %v123_v14 = vadd.f32 %v122_v13, %v121_v10 }
 0x1e8   :  { %163 = vpush %v123_v14 }
 0x215   :  { %s160_s0 = spop %159 }
 0x216   :  { %v126_v15 = vstv %s160_s0  ;;  %s162_s1 = spop %161 }
 0x217   :  { %v127_v17 = vsel %vm125_vm12, %v126_v15, 0.0  ;;  %v129_v18 = vstv %s162_s1 }
 0x218   :  { %v130_v19 = vsel %vm128_vm13, %v129_v18, 0.0 }
 0x219   :  { %s164_s15 = spop %163  ;;  %v131_v20 = vadd.f32 %v130_v19, %v127_v17 }
 0x21a   :  { %v133_v21 = vstv %s164_s15 }
 0x21b   :  { %v134_v22 = vsel %vm132_vm14, %v133_v21, 0.0 }
 0x21c   :  { %v135_v23 = vadd.f32 %v134_v22, %v131_v20 }
 0x21e   :  { %136 = vst [vmem:[#allocation2] sm:$0xff] %v135_v23 }
 0x21f   :  { %189 = shalt.err (!%p186_p4)
}
 0x220   :  { %s190_s21 = scalar_lea.hbm %s282_s2, 128 }
 0x221   :  { %p191_p5 = scmp.ne.s32.totalorder %s282_s2, %s190_s21  ;;  %p194_p6 = scmp.lt.u32.totalorder %s190_s21, %s282_s2 }
 0x223   :  { %p196_p7 = pnand %p194_p6, %p191_p5 }
 0x225   :  { %199 = shalt.err (!%p196_p7)
}
 0x226   :  { %146 = dma.vmem_to_hbm [thread:$0]  %s144_s17, 128, %s282_s2, [#allocation3]  }
 0x227   :  { %200 = dma.done.wait [#allocation3], 128  }
 0x228   :  { %201 = vsyncadd [#allocation3], 4294967168 }
 0x229   :  { %150 = vsyncpa [#allocation3], 1 }

</bundles_post_ra>
